<compile_context>
chip_gen: v5e
topology: v5e:2x2
jax: 0.10.0
libtpu: 0.0.40
codegen_flags: <defaults>
</compile_context>

<pallas_src>
import jax
import jax.numpy as jnp
from jax.experimental import pallas as pl
from jax.experimental.pallas import tpu as pltpu


_LANE = 128
# Target ~512K elements (= 2 MiB for f32, 1 MiB for bf16) per block.
_TARGET_BLOCK_ELEMS = 512 * 1024


def _mish_kernel(x_ref, o_ref):
    x = x_ref[...].astype(jnp.float32)
    # tanh(softplus(x)) = (t^2 + 2t) / (t^2 + 2t + 2), with t = exp(x).
    # Clamp x at 20: tanh(softplus(20)) == 1.0 in f32, and t^2 stays far
    # from f32 overflow. Exact division keeps the 1e-5 tolerance.
    t = jnp.exp(jnp.minimum(x, 20.0))
    u = t * (t + 2.0)
    y = x * (u / (u + 2.0))
    o_ref[...] = y.astype(o_ref.dtype)


def _round_up(v, m):
    return ((v + m - 1) // m) * m


def mish(x):
    """Mish forward: x * tanh(softplus(x)). Elementwise, any shape / float dtype."""
    orig_shape = x.shape
    orig_dtype = x.dtype
    n = x.size
    if n == 0:
        return x

    # Pick the widest lane-dense last dim (multiple of 128) that divides n,
    # so the common (aligned) case needs no padding copy at all.
    width = None
    for w in (1024, 512, 256, _LANE):
        if n % w == 0:
            width = w
            break

    x_flat = jnp.reshape(x, (-1,))
    padded = width is None
    if padded:
        # Ragged tail: pad only up to the next multiple of 128 lanes.
        width = _LANE
        n_pad = _round_up(n, _LANE)
        x_flat = jnp.pad(x_flat, (0, n_pad - n))
    else:
        n_pad = n

    rows = n_pad // width
    x2d = jnp.reshape(x_flat, (rows, width))

    # Block rows: ~_TARGET_BLOCK_ELEMS elements, multiple of 8 sublanes,
    # never (much) larger than the array itself.
    block_rows = max(8, (_TARGET_BLOCK_ELEMS // width) // 8 * 8)
    block_rows = min(block_rows, _round_up(rows, 8))
    grid = (pl.cdiv(rows, block_rows),)

    out2d = pl.pallas_call(
        _mish_kernel,
        out_shape=jax.ShapeDtypeStruct((rows, width), orig_dtype),
        grid_spec=pltpu.PrefetchScalarGridSpec(
            num_scalar_prefetch=0,
            grid=grid,
            in_specs=[pl.BlockSpec((block_rows, width), lambda i: (i, 0))],
            out_specs=pl.BlockSpec((block_rows, width), lambda i: (i, 0)),
        ),
        compiler_params=pltpu.CompilerParams(
            dimension_semantics=("parallel",),
        ),
    )(x2d)

    out_flat = jnp.reshape(out2d, (-1,))
    if padded:
        out_flat = out_flat[:n]
    return jnp.reshape(out_flat, orig_shape)


def _mish_ref(x):
    xf = x.astype(jnp.float32)
    sp = jnp.logaddexp(xf, 0.0)  # softplus
    return (xf * jnp.tanh(sp)).astype(x.dtype)


if __name__ == "__main__":
    key = jax.random.PRNGKey(0)
    x = jax.random.normal(key, (2, 4, 16, 16), dtype=jnp.float32) * 3.0

    y = mish(x)
    y = jax.block_until_ready(y)

    y_ref = _mish_ref(x)
    assert y.shape == x.shape and y.dtype == x.dtype
    assert jnp.allclose(y, y_ref, atol=1e-5, rtol=1e-5), "mismatch vs reference"

    # Also exercise a ragged (non-128-aligned) size through the pad path.
    x2 = jax.random.normal(jax.random.PRNGKey(1), (3, 5, 7), dtype=jnp.float32) * 3.0
    y2 = jax.block_until_ready(mish(x2))
    assert jnp.allclose(y2, _mish_ref(x2), atol=1e-5, rtol=1e-5), "ragged mismatch"

    print("KERNEL_OK")
</pallas_src>

<mosaic_0001>
module attributes {stable_mosaic.version = 11 : i64} {
  func.func @_mish_kernel(%arg0: i32, %arg1: memref<8x1024xf32, #tpu.memory_space<vmem>>, %arg2: memref<8x1024xf32, #tpu.memory_space<vmem>>) attributes {dimension_semantics = [#tpu.dimension_semantics<parallel>], iteration_bounds = array<i64: 1>, scalar_prefetch = 0 : i64, scratch_operands = 0 : i64, tpu.core_type = #tpu.core_type<tc>, window_params = [{transform_indices = @transform_0, window_bounds = array<i64: 8, 1024>}, {transform_indices = @transform_1, window_bounds = array<i64: 8, 1024>}]} {
    %c0 = arith.constant 0 : index
    %c0_0 = arith.constant 0 : index
    %0 = vector.load %arg1[%c0, %c0_0] : memref<8x1024xf32, #tpu.memory_space<vmem>>, vector<8x1024xf32>
    %cst = arith.constant 2.000000e+01 : f32
    %1 = vector.broadcast %cst : f32 to vector<8x1024xf32>
    %2 = arith.minimumf %0, %1 : vector<8x1024xf32>
    %3 = math.exp %2 : vector<8x1024xf32>
    %cst_1 = arith.constant 2.000000e+00 : f32
    %4 = vector.broadcast %cst_1 : f32 to vector<8x1024xf32>
    %5 = arith.addf %3, %4 : vector<8x1024xf32>
    %6 = arith.mulf %3, %5 : vector<8x1024xf32>
    %cst_2 = arith.constant 2.000000e+00 : f32
    %7 = vector.broadcast %cst_2 : f32 to vector<8x1024xf32>
    %8 = arith.addf %6, %7 : vector<8x1024xf32>
    %9 = arith.divf %6, %8 : vector<8x1024xf32>
    %10 = arith.mulf %0, %9 : vector<8x1024xf32>
    %c0_3 = arith.constant 0 : index
    %c0_4 = arith.constant 0 : index
    %11 = vector.load %arg2[%c0_3, %c0_4] : memref<8x1024xf32, #tpu.memory_space<vmem>>, vector<8x1024xf32>
    tpu.vector_store %arg2[%c0_3, %c0_4], %10 {strides = array<i32>} : memref<8x1024xf32, #tpu.memory_space<vmem>>, vector<8x1024xf32>,
    return
  }
  func.func @transform_0(%arg0: i32) -> (i32, i32) {
    %c0_i32 = arith.constant 0 : i32
    %c0_i32_0 = arith.constant 0 : i32
    return %arg0, %c0_i32 : i32, i32
  }
  func.func @transform_1(%arg0: i32) -> (i32, i32) {
    %c0_i32 = arith.constant 0 : i32
    %c0_i32_0 = arith.constant 0 : i32
    return %arg0, %c0_i32 : i32, i32
  }
}

</mosaic_0001>

<bundles_post_ra>
// kernel: tpu_custom_call.1
= control target key start
LH: loop header
LB: loop body
LE: loop exit
PB: predicated region body
PF: predicated region fallthrough
CT: control target
= control target key end

     0   :  { %6 = vsyncpa [#allocation3], 0  ;;  %s537_s0 = inlined_call_operand.hbm [shape: f32[2,1024], index: 0, kind: input, shape index: {}]   ;;  %s538_s1 = inlined_call_operand.hbm [shape: f32[2,1024], index: 1, kind: output, shape index: {}]  }
   0x1   :  { %7 = vsyncpa [#allocation4], 0 }
   0x2   :  { %11 = vsyncadd [#allocation3], 768  ;;  %s12_s8 = sshll.u32 %s537_s0, 4  ;;  %s324_s9 = smov [#allocation2]   ;;  %s13_s8 = int_to_ptr.hbm [resolvable:$true] %s12_s8 }
   0x3   :  { %s14_s10 = sshll.u32 %s324_s9, 4  ;;  %s325_s11 = smov 256   ;;  %s15_s10 = int_to_ptr.vmem [resolvable:$true] %s14_s10 }
   0x4   :  { %s326_s12 = smov 16  }
   0x5   :  { %20 = dma.hbm_to_vmem [thread:$0]  %s13_s8, 256, %s15_s10, [#allocation3], %s325_s11, %s325_s11, %s326_s12  }
   0x6   :  { %320 = dma.done.wait [#allocation3], 1024  }
   0x7   :  { %321 = vsyncadd [#allocation3], 4294966272  ;;  %v344_v0 = vld [vmem:[#allocation2] sm:$0xff]  ;;  %v346_v1 = vld [vmem:[#allocation2 + $0x8] sm:$0xff] }
   0x8   :  { %v348_v2 = vld [vmem:[#allocation2 + $0x10] sm:$0xff]  ;;  %v33_v3 = vmin.f32 %v344_v0, 20.0  ;;  %v34_v4 = vmin.f32 %v346_v1, 20.0  ;;  %v353_v6 = vld [vmem:[#allocation2 + $0x18] sm:$0xff]  ;;  %v355_v7 = vld [vmem:[#allocation2 + $0x20] sm:$0xff] }
   0x9   :  { %v35_v5 = vmin.f32 %v348_v2, 20.0  ;;  %v357_v8 = vld [vmem:[#allocation2 + $0x28] sm:$0xff]  ;;  %v36_v9 = vmin.f32 %v353_v6, 20.0  ;;  %v37_v10 = vmin.f32 %v355_v7, 20.0  ;;  %v362_v17 = vld [vmem:[#allocation2 + $0x30] sm:$0xff]  ;;  %v365_v20 = vld [vmem:[#allocation2 + $0x38] sm:$0xff] }
   0xa   :  { %v38_v11 = vmin.f32 %v357_v8, 20.0  ;;  %v41_v12 = vmul.f32 1.442695, %v33_v3  ;;  %v43_v13 = vmul.f32 1.442695, %v34_v4  ;;  %v39_v19 = vmin.f32 %v362_v17, 20.0 }
   0xb   :  { %v45_v14 = vmul.f32 1.442695, %v35_v5  ;;  %v47_v15 = vmul.f32 1.442695, %v36_v9  ;;  %v49_v16 = vmul.f32 1.442695, %v37_v10 }
   0xc   :  { %240 = vpow2.f32 %v41_v12  ;;  %v51_v18 = vmul.f32 1.442695, %v38_v11  ;;  %v53_v24 = vmul.f32 1.442695, %v39_v19  ;;  %v40_v25 = vmin.f32 %v365_v20, 20.0 }
   0xd   :  { %242 = vpow2.f32 %v43_v13 }
   0xe   :  { %244 = vpow2.f32 %v45_v14  ;;  %v55_v37 = vmul.f32 1.442695, %v40_v25 }
   0xf   :  { %246 = vpow2.f32 %v47_v15 }
  0x10   :  { %248 = vpow2.f32 %v49_v16 }
  0x11   :  { %250 = vpow2.f32 %v51_v18 }
  0x12   :  { %v241_v21 = vpop.eup %240  ;;  %252 = vpow2.f32 %v53_v24 }
  0x13   :  { %v243_v22 = vpop.eup %242  ;;  %v57_v23 = vadd.f32 2.0, %v241_v21 }
  0x14   :  { %v245_v26 = vpop.eup %244  ;;  %v58_v27 = vadd.f32 2.0, %v243_v22 }
  0x15   :  { %v247_v28 = vpop.eup %246  ;;  %v368_v29 = vmul.f32 %v241_v21, %v57_v23  ;;  %v59_v30 = vadd.f32 2.0, %v245_v26 }
  0x16   :  { %v249_v31 = vpop.eup %248  ;;  %v370_v32 = vmul.f32 %v243_v22, %v58_v27  ;;  %v60_v33 = vadd.f32 2.0, %v247_v28 }
  0x17   :  { %v251_v34 = vpop.eup %250  ;;  %v73_v35 = vadd.f32 2.0, %v368_v29  ;;  %v373_v36 = vmul.f32 %v245_v26, %v59_v30  ;;  %v61_v40 = vadd.f32 2.0, %v249_v31 }
  0x18   :  { %v376_v38 = vadd.f32 2.0, %v370_v32  ;;  %v378_v39 = vmul.f32 %v247_v28, %v60_v33  ;;  %v62_v41 = vadd.f32 2.0, %v251_v34  ;;  %v393_v50 = vpop.eup %252 }
  0x19   :  { %254 = vrcp.f32 %v73_v35  ;;  %v90_v42 = vand.u32 2147483647, %v73_v35  ;;  %v92_v43 = vand.u32 2147483648, %v73_v35  ;;  %v384_v46 = vadd.f32 2.0, %v373_v36 }
  0x1a   :  { %256 = vrcp.f32 %v376_v38  ;;  %v105_v44 = vand.u32 2147483647, %v376_v38  ;;  %v107_v45 = vand.u32 2147483648, %v376_v38  ;;  %v387_v47 = vadd.f32 2.0, %v378_v39 }
  0x1b   :  { %v389_v48 = vmul.f32 %v249_v31, %v61_v40  ;;  %v391_v49 = vmul.f32 %v251_v34, %v62_v41  ;;  %258 = vpow2.f32 %v55_v37  ;;  %vm86_vm0 = vweird.f32 %v73_v35 }
  0x1c   :  { %vm101_vm1 = vweird.f32 %v376_v38  ;;  %260 = vrcp.f32 %v384_v46  ;;  %v122_v51 = vand.u32 2147483648, %v384_v46  ;;  %vm398_vm2 = vcmp.eq.f32.partialorder %v90_v42, 8.507059e+37 }
  0x1d   :  { %v93_v53 = vor.u32 1.1754944e-38, %v92_v43  ;;  %v120_v54 = vand.u32 2147483647, %v384_v46  ;;  %262 = vrcp.f32 %v387_v47  ;;  %v137_v55 = vand.u32 2147483648, %v387_v47 }
  0x1e   :  { %vm405_vm3 = vcmp.eq.f32.partialorder %v105_v44, 8.507059e+37  ;;  %v108_v58 = vor.u32 1.1754944e-38, %v107_v45  ;;  %v135_v59 = vand.u32 2147483647, %v387_v47  ;;  %v411_v60 = vadd.f32 2.0, %v389_v48 }
  0x1f   :  { %v255_v56 = vpop.eup %254  ;;  %v414_v61 = vadd.f32 2.0, %v391_v49  ;;  %vm116_vm4 = vweird.f32 %v384_v46  ;;  %v417_v3 = vor.u32 1.1754944e-38, %v122_v51  ;;  %vm131_vm5 = vweird.f32 %v387_v47 }
  0x20   :  { %v257_v62 = vpop.eup %256  ;;  %v82_v63 = vmul.f32 %v255_v56, %v73_v35  ;;  %vm87_vm6 = vweird.f32 %v255_v56  ;;  %v421_v5 = vor.u32 1.1754944e-38, %v137_v55  ;;  %264 = vrcp.f32 %v411_v60 }
  0x21   :  { %v97_v4 = vmul.f32 %v257_v62, %v376_v38  ;;  %v424_v9 = vpop.eup %258  ;;  %vm426_vm7 = vcmp.eq.f32.partialorder %v120_v54, 8.507059e+37  ;;  %v150_v12 = vand.u32 2147483647, %v411_v60  ;;  %v152_v13 = vand.u32 2147483648, %v411_v60  ;;  %vm444_vm12 = vmor %vm86_vm0, %vm87_vm6 }
  0x22   :  { %v83_v10 = vsub.f32 1.0, %v82_v63  ;;  %266 = vrcp.f32 %v414_v61  ;;  %v261_v14 = vpop.eup %260  ;;  %vm102_vm8 = vweird.f32 %v257_v62  ;;  %vm433_vm9 = vcmp.eq.f32.partialorder %v135_v59, 8.507059e+37 }
  0x23   :  { %v98_v15 = vsub.f32 1.0, %v97_v4  ;;  %vm146_vm10 = vweird.f32 %v411_v60  ;;  %v167_v18 = vand.u32 2147483648, %v414_v61  ;;  %v263_v19 = vpop.eup %262  ;;  %v112_v22 = vmul.f32 %v261_v14, %v384_v46  ;;  %vm452_vm15 = vmor %vm101_vm1, %vm102_vm8 }
  0x24   :  { %v84_v21 = vmul.f32 %v255_v56, %v83_v10  ;;  %v165_v23 = vand.u32 2147483647, %v414_v61  ;;  %vm117_vm13 = vweird.f32 %v261_v14  ;;  %v127_v26 = vmul.f32 %v263_v19, %v387_v47 }
  0x25   :  { %v99_v25 = vmul.f32 %v257_v62, %v98_v15  ;;  %vm132_vm14 = vweird.f32 %v263_v19  ;;  %v113_v30 = vsub.f32 1.0, %v112_v22  ;;  %vm456_vm11 = vcmp.eq.f32.partialorder %v150_v12, 8.507059e+37  ;;  %vm472_vm1 = vmor %vm116_vm4, %vm117_vm13 }
  0x26   :  { %v85_v27 = vadd.f32 %v255_v56, %v84_v21  ;;  %v153_v33 = vor.u32 1.1754944e-38, %v152_v13  ;;  %v168_v34 = vor.u32 1.1754944e-38, %v167_v18  ;;  %v265_v35 = vpop.eup %264  ;;  %v128_v40 = vsub.f32 1.0, %v127_v26 }
  0x27   :  { %v100_v37 = vadd.f32 %v257_v62, %v99_v25  ;;  %v63_v41 = vadd.f32 2.0, %v393_v50  ;;  %v64_v42 = vadd.f32 2.0, %v424_v9  ;;  %v114_v44 = vmul.f32 %v261_v14, %v113_v30 }
  0x28   :  { %v267_v43 = vpop.eup %266  ;;  %v89_v38 = vsel %vm444_vm12, %v255_v56, %v85_v27  ;;  %v142_v45 = vmul.f32 %v265_v35, %v411_v60  ;;  %vm147_vm0 = vweird.f32 %v265_v35  ;;  %v129_v59 = vmul.f32 %v263_v19, %v128_v40 }
  0x29   :  { %v94_v51 = vsel %vm398_vm2, %v93_v53, %v89_v38  ;;  %v104_v54 = vsel %vm452_vm15, %v257_v62, %v100_v37  ;;  %v157_v56 = vmul.f32 %v267_v43, %v414_v61  ;;  %v115_v52 = vadd.f32 %v261_v14, %v114_v44  ;;  %vm483_vm2 = vmor %vm131_vm5, %vm132_vm14 }
  0x2a   :  { %v95_v63 = vmul.f32 %v94_v51, %v368_v29  ;;  %v109_v4 = vsel %vm405_vm3, %v108_v58, %v104_v54  ;;  %v143_v46 = vsub.f32 1.0, %v142_v45  ;;  %v130_v10 = vadd.f32 %v263_v19, %v129_v59  ;;  %vm501_vm3 = vmor %vm146_vm10, %vm147_vm0 }
  0x2b   :  { %v110_v62 = vmul.f32 %v109_v4, %v370_v32  ;;  %v158_v12 = vsub.f32 1.0, %v157_v56  ;;  %vm162_vm4 = vweird.f32 %v267_v43  ;;  %v119_v29 = vsel %vm472_vm1, %v261_v14, %v115_v52 }
  0x2c   :  { %v201_v13 = vmul.f32 %v95_v63, %v344_v0  ;;  %v144_v57 = vmul.f32 %v265_v35, %v143_v46  ;;  %v71_v58 = vmul.f32 %v393_v50, %v63_v41  ;;  %v124_v15 = vsel %vm426_vm7, %v417_v3, %v119_v29 }
  0x2d   :  { %v202_v47 = vmul.f32 %v110_v62, %v346_v1  ;;  %v134_v32 = vsel %vm483_vm2, %v263_v19, %v130_v10  ;;  %v159_v14 = vmul.f32 %v267_v43, %v158_v12  ;;  %v125_v50 = vmul.f32 %v124_v15, %v373_v36 }
  0x2e   :  { %209 = vst [vmem:[#allocation5] sm:$0xff] %v201_v13  ;;  %v139_v1 = vsel %vm433_vm9, %v421_v5, %v134_v32  ;;  %v145_v11 = vadd.f32 %v265_v35, %v144_v57  ;;  %vm559_vm5 = vweird.f32 %v414_v61  ;;  %v79_v60 = vadd.f32 2.0, %v71_v58 }
  0x2f   :  { %vm511_vm6 = vmor %vm559_vm5, %vm162_vm4  ;;  %210 = vst [vmem:[#allocation5 + $0x8] sm:$0xff] %v202_v47  ;;  %v140_v18 = vmul.f32 %v139_v1, %v378_v39  ;;  %v160_v19 = vadd.f32 %v267_v43, %v159_v14  ;;  %vm166_vm7 = vcmp.eq.f32.partialorder %v165_v23, 8.507059e+37  ;;  %v72_v21 = vmul.f32 %v424_v9, %v64_v42 }
  0x30   :  { %v203_v36 = vmul.f32 %v125_v50, %v348_v2  ;;  %v149_v5 = vsel %vm501_vm3, %v265_v35, %v145_v11  ;;  %268 = vrcp.f32 %v79_v60  ;;  %v180_v27 = vand.u32 2147483647, %v79_v60 }
  0x31   :  { %v204_v61 = vmul.f32 %v140_v18, %v353_v6  ;;  %v154_v16 = vsel %vm456_vm11, %v153_v33, %v149_v5  ;;  %v164_v22 = vsel %vm511_vm6, %v267_v43, %v160_v19  ;;  %v80_v24 = vadd.f32 2.0, %v72_v21 }
  0x32   :  { %211 = vst [vmem:[#allocation5 + $0x10] sm:$0xff] %v203_v36  ;;  %v155_v39 = vmul.f32 %v154_v16, %v389_v48  ;;  %v169_v23 = vsel %vm166_vm7, %v168_v34, %v164_v22  ;;  %v182_v28 = vand.u32 2147483648, %v79_v60  ;;  %vm176_vm8 = vweird.f32 %v79_v60 }
  0x33   :  { %212 = vst [vmem:[#allocation5 + $0x18] sm:$0xff] %v204_v61  ;;  %v170_v2 = vmul.f32 %v169_v23, %v391_v49  ;;  %270 = vrcp.f32 %v80_v24  ;;  %vm181_vm11 = vcmp.eq.f32.partialorder %v180_v27, 8.507059e+37  ;;  %vm191_vm12 = vweird.f32 %v80_v24 }
  0x34   :  { %v205_v9 = vmul.f32 %v155_v39, %v355_v7  ;;  %v183_v49 = vor.u32 1.1754944e-38, %v182_v28  ;;  %v197_v7 = vand.u32 2147483648, %v80_v24 }
  0x35   :  { %v206_v25 = vmul.f32 %v170_v2, %v357_v8  ;;  %v195_v8 = vand.u32 2147483647, %v80_v24 }
  0x36   :  { %v269_v6 = vpop.eup %268  ;;  %213 = vst [vmem:[#allocation5 + $0x20] sm:$0xff] %v205_v9  ;;  %v198_v42 = vor.u32 1.1754944e-38, %v197_v7 }
  0x37   :  { %214 = vst [vmem:[#allocation5 + $0x28] sm:$0xff] %v206_v25  ;;  %v172_v26 = vmul.f32 %v269_v6, %v79_v60  ;;  %vm177_vm9 = vweird.f32 %v269_v6  ;;  %vm196_vm15 = vcmp.eq.f32.partialorder %v195_v8, 8.507059e+37 }
  0x38   :  { %vm178_vm10 = vmor %vm176_vm8, %vm177_vm9 }
  0x39   :  { %v173_v30 = vsub.f32 1.0, %v172_v26  ;;  %v271_v48 = vpop.eup %270 }
  0x3a   :  { %v187_v33 = vmul.f32 %v271_v48, %v80_v24  ;;  %vm192_vm13 = vweird.f32 %v271_v48 }
  0x3b   :  { %v174_v31 = vmul.f32 %v269_v6, %v173_v30  ;;  %vm193_vm14 = vmor %vm191_vm12, %vm192_vm13 }
  0x3c   :  { %v188_v35 = vsub.f32 1.0, %v187_v33 }
  0x3d   :  { %v175_v34 = vadd.f32 %v269_v6, %v174_v31 }
  0x3e   :  { %v189_v40 = vmul.f32 %v271_v48, %v188_v35 }
  0x3f   :  { %v179_v37 = vsel %vm178_vm10, %v269_v6, %v175_v34 }
  0x40   :  { %v184_v41 = vsel %vm181_vm11, %v183_v49, %v179_v37  ;;  %v190_v38 = vadd.f32 %v271_v48, %v189_v40 }
  0x41   :  { %v185_v43 = vmul.f32 %v184_v41, %v71_v58 }
  0x42   :  { %v194_v45 = vsel %vm193_vm14, %v271_v48, %v190_v38 }
  0x43   :  { %v207_v44 = vmul.f32 %v185_v43, %v362_v17  ;;  %v199_v51 = vsel %vm196_vm15, %v198_v42, %v194_v45 }
  0x44   :  { %v200_v54 = vmul.f32 %v199_v51, %v72_v21 }
  0x45   :  { %215 = vst [vmem:[#allocation5 + $0x30] sm:$0xff] %v207_v44 }
  0x46   :  { %v208_v55 = vmul.f32 %v200_v54, %v365_v20 }
  0x48   :  { %216 = vst [vmem:[#allocation5 + $0x38] sm:$0xff] %v208_v55 }
  0x49   :  { %220 = vsyncadd [#allocation4], 768  ;;  %s223_s14 = sshll.u32 %s538_s1, 4  ;;  %s327_s15 = smov [#allocation5]   ;;  %s224_s14 = int_to_ptr.hbm [resolvable:$true] %s223_s14 }
  0x4a   :  { %s221_s16 = sshll.u32 %s327_s15, 4  ;;  %s222_s16 = int_to_ptr.vmem [resolvable:$true] %s221_s16 }
  0x4b   :  { %229 = dma.vmem_to_hbm [thread:$0]  %s222_s16, 256, %s224_s14, [#allocation4], %s325_s11, %s325_s11, %s326_s12  }
  0x4c   :  { %322 = dma.done.wait [#allocation4], 1024  }
  0x4d   :  { %323 = vsyncadd [#allocation4], 4294966272 }
  0x4e   :  { %234 = vsyncpa [#allocation3], 1 }
  0x4f   :  { %235 = vsyncpa [#allocation4], 1 }

</bundles_post_ra>
